<compile_context>
chip_gen: v6e
topology: v6e:2x2x1
jax: 0.10.0
libtpu: 0.0.40
codegen_flags: <defaults>
</compile_context>

<pallas_src>
import functools

import jax
import jax.numpy as jnp
from jax.experimental import pallas as pl
from jax.experimental.pallas import tpu as pltpu

LANE = 128
SUBLANE = 8


def _round_up(x, m):
    return (x + m - 1) // m * m


def actor_critic_kernel(
    action_dim,
    x_ref,
    w1_ref, b1_ref, w2_ref, b2_ref,       # feature extractor (hidden padded to Hp)
    wh1_ref, bh1_ref,                     # packed actor/critic hidden layer (Hp, HW)
    wh2_ref, bh2_ref,                     # packed logits/value head (HW, OUT)
    out_ref,                              # (TILE_B, OUT): lanes [0,A) probs, lane A value
):
    # Matmul operands in the weights' dtype (f32 or bf16); accumulation, bias,
    # ReLU and softmax always in f32 (preferred_element_type=f32).
    cdt = w1_ref.dtype
    lowp = cdt == jnp.bfloat16

    x = x_ref[...].astype(cdt)

    # ---- feature extractor: Linear -> ReLU -> Linear -> ReLU ----
    h = jnp.dot(x, w1_ref[...], preferred_element_type=jnp.float32) + b1_ref[...]
    h = jnp.maximum(h, 0.0)
    feats = jnp.dot(h.astype(cdt), w2_ref[...],
                    preferred_element_type=jnp.float32) + b2_ref[...]
    feats = jnp.maximum(feats, 0.0)

    # ---- packed actor/critic hidden layer (one matmul) ----
    hh = jnp.dot(feats.astype(cdt), wh1_ref[...],
                 preferred_element_type=jnp.float32) + bh1_ref[...]
    hh = jnp.maximum(hh, 0.0)

    # ---- packed head: actor logits (lanes < A) and critic value (lane A) ----
    fused = jnp.dot(hh.astype(cdt), wh2_ref[...],
                    preferred_element_type=jnp.float32) + bh2_ref[...]

    lane = jax.lax.broadcasted_iota(jnp.int32, fused.shape, 1)
    is_actor = lane < action_dim

    # Softmax over real action lanes only (padded lanes masked to -inf-ish).
    logits = jnp.where(is_actor, fused, jnp.float32(-1e30))
    m = jnp.max(logits, axis=-1, keepdims=True)
    e = jnp.exp(logits - m)
    # approx=True lowers to the EUP vrcp slot (free in the bundle); only used
    # on the relaxed-tolerance bf16 path so the 1e-4 f32 asserts stay tight.
    inv_denom = pl.reciprocal(jnp.sum(e, axis=-1, keepdims=True), approx=lowp)
    probs = e * inv_denom

    # Lane-dense merged output: probs | value | zeros.
    merged = jnp.where(is_actor, probs, jnp.where(lane == action_dim, fused, 0.0))
    out_ref[...] = merged.astype(out_ref.dtype)


def pack_params(p, state_dim, action_dim, hidden_dim, weight_dtype=jnp.float32):
    """Pad hidden to 128 lanes and pack actor/critic head weights together.

    If 2*hidden_dim <= 128 the two hidden blocks share one 128-lane slab
    (actor at lanes [0,H), critic at lanes [H,2H)); otherwise they are
    concatenated at [actor | critic] with a 2*Hp-wide slab.
    """
    Hp = _round_up(hidden_dim, LANE)
    OUT = _round_up(action_dim + 1, LANE)
    off_c = hidden_dim if 2 * hidden_dim <= LANE else Hp
    HW = _round_up(off_c + hidden_dim, LANE)

    w1 = jnp.zeros((state_dim, Hp), jnp.float32).at[:, :hidden_dim].set(p["w1"])
    b1 = jnp.zeros((1, Hp), jnp.float32).at[:, :hidden_dim].set(p["b1"])
    w2 = jnp.zeros((Hp, Hp), jnp.float32).at[:hidden_dim, :hidden_dim].set(p["w2"])
    b2 = jnp.zeros((1, Hp), jnp.float32).at[:, :hidden_dim].set(p["b2"])

    wh1 = jnp.zeros((Hp, HW), jnp.float32)
    wh1 = wh1.at[:hidden_dim, :hidden_dim].set(p["wa1"])
    wh1 = wh1.at[:hidden_dim, off_c:off_c + hidden_dim].set(p["wc1"])
    bh1 = jnp.zeros((1, HW), jnp.float32)
    bh1 = bh1.at[:, :hidden_dim].set(p["ba1"])
    bh1 = bh1.at[:, off_c:off_c + hidden_dim].set(p["bc1"])

    wh2 = jnp.zeros((HW, OUT), jnp.float32)
    wh2 = wh2.at[:hidden_dim, :action_dim].set(p["wa2"])
    wh2 = wh2.at[off_c:off_c + hidden_dim, action_dim:action_dim + 1].set(p["wc2"])
    bh2 = jnp.zeros((1, OUT), jnp.float32)
    bh2 = bh2.at[:, :action_dim].set(p["ba2"])
    bh2 = bh2.at[:, action_dim:action_dim + 1].set(p["bc2"])

    wdt = weight_dtype
    # Biases stay f32 (added in f32 after the MXU); only matmul weights cast.
    return (w1.astype(wdt), b1, w2.astype(wdt), b2,
            wh1.astype(wdt), bh1, wh2.astype(wdt), bh2)


def _choose_batch_tiling(B, max_tile=2048):
    """Pick (B_pad, tile_b): minimal batch padding, large even tiles, >=2 steps."""
    # Pad only to a sublane multiple (or 128 rows for large B, <12.5% extra),
    # never to a full tile -> no near-2x padded MXU/DMA work.
    B_pad = _round_up(B, LANE) if B > 1024 else _round_up(B, SUBLANE)
    # Largest multiple-of-8 divisor of B_pad, capped at max_tile (VMEM-safe on
    # v7x), leaving >= 2 grid steps whenever possible so the "parallel" batch
    # axis shards across both TensorCores on v7x.
    cap = min(max_tile, B_pad)
    if B_pad >= 2 * SUBLANE:
        cap = min(cap, B_pad // 2)
    cap = max(SUBLANE, (cap // SUBLANE) * SUBLANE)
    tile_b = SUBLANE
    t = cap
    while t >= SUBLANE:
        if B_pad % t == 0:
            tile_b = t
            break
        t -= SUBLANE
    return B_pad, tile_b


def actor_critic_forward(state, params, action_dim, hidden_dim, *,
                         use_bf16=False, tile_b=None):
    """state: [B, state_dim] f32; params: dict of [in,out] weights, [1,out] biases."""
    B, state_dim = state.shape
    Hp = _round_up(hidden_dim, LANE)
    OUT = _round_up(action_dim + 1, LANE)

    wdt = jnp.bfloat16 if use_bf16 else jnp.float32
    packed = pack_params(params, state_dim, action_dim, hidden_dim, weight_dtype=wdt)
    HW = packed[4].shape[1]

    if tile_b is None:
        B_pad, tile_b = _choose_batch_tiling(B)
    else:
        B_pad = _round_up(B, tile_b)
    x = state
    if B_pad != B:
        x = jnp.zeros((B_pad, state_dim), state.dtype).at[:B].set(state)

    grid = (B_pad // tile_b,)

    x_spec = pl.BlockSpec((tile_b, state_dim), lambda i: (i, 0))
    weight_specs = [pl.BlockSpec(a.shape, lambda i: (0, 0)) for a in packed]
    out_spec = pl.BlockSpec((tile_b, OUT), lambda i: (i, 0))

    out_dtype = jnp.bfloat16 if use_bf16 else jnp.float32
    out_itemsize = 2 if use_bf16 else 4

    flops = 2 * B_pad * (state_dim * Hp + Hp * Hp + Hp * HW + HW * OUT)
    bytes_accessed = (
        4 * B_pad * state_dim
        + out_itemsize * B_pad * OUT
        + sum(int(a.size) * int(a.dtype.itemsize) for a in packed)
    )
    cost = pl.CostEstimate(flops=flops, transcendentals=B_pad * action_dim,
                           bytes_accessed=bytes_accessed)

    out = pl.pallas_call(
        functools.partial(actor_critic_kernel, action_dim),
        out_shape=jax.ShapeDtypeStruct((B_pad, OUT), out_dtype),
        grid=grid,
        in_specs=[x_spec] + weight_specs,
        out_specs=out_spec,
        compiler_params=pltpu.CompilerParams(
            dimension_semantics=("parallel",),
            vmem_limit_bytes=32 * 1024 * 1024,
        ),
        cost_estimate=cost,
    )(x, *packed)

    probs = out[:B, :action_dim].astype(jnp.float32)
    value = out[:B, action_dim:action_dim + 1].astype(jnp.float32)
    return probs, value


def init_params(key, state_dim, action_dim, hidden_dim):
    """Deterministic synthetic params. Weights [in,out], biases [1,out]."""
    def linear(k, fan_in, fan_out):
        kw, kb = jax.random.split(k)
        bound = 1.0 / jnp.sqrt(fan_in)
        w = jax.random.uniform(kw, (fan_in, fan_out), jnp.float32, -bound, bound)
        b = jax.random.uniform(kb, (1, fan_out), jnp.float32, -bound, bound)
        return w, b

    keys = jax.random.split(key, 6)
    p = {}
    p["w1"], p["b1"] = linear(keys[0], state_dim, hidden_dim)
    p["w2"], p["b2"] = linear(keys[1], hidden_dim, hidden_dim)
    p["wa1"], p["ba1"] = linear(keys[2], hidden_dim, hidden_dim)
    p["wa2"], p["ba2"] = linear(keys[3], hidden_dim, action_dim)
    p["wc1"], p["bc1"] = linear(keys[4], hidden_dim, hidden_dim)
    p["wc2"], p["bc2"] = linear(keys[5], hidden_dim, 1)
    return p


def reference_forward(state, p):
    """Pure-JAX reference matching the PyTorch module (full-precision matmuls)."""
    hp = "highest"
    h = jnp.maximum(jnp.dot(state, p["w1"], precision=hp) + p["b1"], 0.0)
    feats = jnp.maximum(jnp.dot(h, p["w2"], precision=hp) + p["b2"], 0.0)
    a = jnp.maximum(jnp.dot(feats, p["wa1"], precision=hp) + p["ba1"], 0.0)
    probs = jax.nn.softmax(jnp.dot(a, p["wa2"], precision=hp) + p["ba2"], axis=-1)
    c = jnp.maximum(jnp.dot(feats, p["wc1"], precision=hp) + p["bc1"], 0.0)
    value = jnp.dot(c, p["wc2"], precision=hp) + p["bc2"]
    return probs, value


if __name__ == "__main__":
    B, state_dim, action_dim, hidden_dim = 2, 16, 8, 32

    key = jax.random.PRNGKey(0)
    k_state, k_params = jax.random.split(key)
    state = jax.random.normal(k_state, (B, state_dim), jnp.float32)
    params = init_params(k_params, state_dim, action_dim, hidden_dim)

    ref_probs, ref_value = reference_forward(state, params)

    # Default f32 path: tight tolerance against the full-precision reference.
    probs, value = actor_critic_forward(state, params, action_dim, hidden_dim)
    jax.block_until_ready((probs, value))
    assert probs.shape == (B, action_dim) and value.shape == (B, 1)
    assert jnp.allclose(probs, ref_probs, atol=1e-4, rtol=1e-4)
    assert jnp.allclose(value, ref_value, atol=1e-4, rtol=1e-4)
    assert jnp.allclose(jnp.sum(probs, axis=-1), 1.0, atol=1e-5)

    # bf16-weight path (MXU-native, approx recip, bf16 output slab): relaxed tol.
    probs_bf, value_bf = actor_critic_forward(
        state, params, action_dim, hidden_dim, use_bf16=True)
    jax.block_until_ready((probs_bf, value_bf))
    assert jnp.allclose(probs_bf, ref_probs, atol=5e-2, rtol=5e-2)
    assert jnp.allclose(value_bf, ref_value, atol=5e-2, rtol=5e-2)

    # TODO(synk): Categorical sampling in ActorCritic.act() is host-side policy
    # logic (torch.distributions) and is intentionally left outside the kernel.
    print("KERNEL_OK")
</pallas_src>

<mosaic_0001>
module attributes {stable_mosaic.version = 11 : i64} {
  func.func @actor_critic_kernel(%arg0: i32, %arg1: memref<8x16xf32, #tpu.memory_space<vmem>>, %arg2: memref<16x128xf32, #tpu.memory_space<vmem>>, %arg3: memref<1x128xf32, #tpu.memory_space<vmem>>, %arg4: memref<128x128xf32, #tpu.memory_space<vmem>>, %arg5: memref<1x128xf32, #tpu.memory_space<vmem>>, %arg6: memref<128x128xf32, #tpu.memory_space<vmem>>, %arg7: memref<1x128xf32, #tpu.memory_space<vmem>>, %arg8: memref<128x128xf32, #tpu.memory_space<vmem>>, %arg9: memref<1x128xf32, #tpu.memory_space<vmem>>, %arg10: memref<8x128xf32, #tpu.memory_space<vmem>>) attributes {dimension_semantics = [#tpu.dimension_semantics<parallel>], iteration_bounds = array<i64: 1>, scalar_prefetch = 0 : i64, scratch_operands = 0 : i64, tpu.core_type = #tpu.core_type<tc>, window_params = [{transform_indices = @transform_0, window_bounds = array<i64: 8, 16>}, {pipeline_mode = #tpu.pipeline_mode<synchronous>, transform_indices = @transform_1, window_bounds = array<i64: 16, 128>}, {pipeline_mode = #tpu.pipeline_mode<synchronous>, transform_indices = @transform_2, window_bounds = array<i64: 1, 128>}, {pipeline_mode = #tpu.pipeline_mode<synchronous>, transform_indices = @transform_3, window_bounds = array<i64: 128, 128>}, {pipeline_mode = #tpu.pipeline_mode<synchronous>, transform_indices = @transform_4, window_bounds = array<i64: 1, 128>}, {pipeline_mode = #tpu.pipeline_mode<synchronous>, transform_indices = @transform_5, window_bounds = array<i64: 128, 128>}, {pipeline_mode = #tpu.pipeline_mode<synchronous>, transform_indices = @transform_6, window_bounds = array<i64: 1, 128>}, {pipeline_mode = #tpu.pipeline_mode<synchronous>, transform_indices = @transform_7, window_bounds = array<i64: 128, 128>}, {pipeline_mode = #tpu.pipeline_mode<synchronous>, transform_indices = @transform_8, window_bounds = array<i64: 1, 128>}, {transform_indices = @transform_9, window_bounds = array<i64: 8, 128>}]} {
    %c0 = arith.constant 0 : index
    %c0_0 = arith.constant 0 : index
    %0 = vector.load %arg1[%c0, %c0_0] : memref<8x16xf32, #tpu.memory_space<vmem>>, vector<8x16xf32>
    %c0_1 = arith.constant 0 : index
    %c0_2 = arith.constant 0 : index
    %1 = vector.load %arg2[%c0_1, %c0_2] : memref<16x128xf32, #tpu.memory_space<vmem>>, vector<16x128xf32>
    %cst = arith.constant dense<0.000000e+00> : vector<8x128xf32>
    %2 = tpu.matmul %0, %1, %cst {dimension_numbers = #tpu.dot_dimension_numbers<[1], [0], [0], [1], [0, 0, 1, 1], [], []>} : vector<8x16xf32>, vector<16x128xf32>, vector<8x128xf32> -> vector<8x128xf32>
    %c0_3 = arith.constant 0 : index
    %c0_4 = arith.constant 0 : index
    %3 = vector.load %arg3[%c0_3, %c0_4] : memref<1x128xf32, #tpu.memory_space<vmem>>, vector<1x128xf32>
    %4 = vector.broadcast %3 : vector<1x128xf32> to vector<8x128xf32>
    %5 = arith.addf %2, %4 : vector<8x128xf32>
    %cst_5 = arith.constant 0.000000e+00 : f32
    %6 = vector.broadcast %cst_5 : f32 to vector<8x128xf32>
    %7 = arith.maximumf %5, %6 : vector<8x128xf32>
    %c0_6 = arith.constant 0 : index
    %c0_7 = arith.constant 0 : index
    %8 = vector.load %arg4[%c0_6, %c0_7] : memref<128x128xf32, #tpu.memory_space<vmem>>, vector<128x128xf32>
    %cst_8 = arith.constant dense<0.000000e+00> : vector<8x128xf32>
    %9 = tpu.matmul %7, %8, %cst_8 {dimension_numbers = #tpu.dot_dimension_numbers<[1], [0], [0], [1], [0, 0, 1, 1], [], []>} : vector<8x128xf32>, vector<128x128xf32>, vector<8x128xf32> -> vector<8x128xf32>
    %c0_9 = arith.constant 0 : index
    %c0_10 = arith.constant 0 : index
    %10 = vector.load %arg5[%c0_9, %c0_10] : memref<1x128xf32, #tpu.memory_space<vmem>>, vector<1x128xf32>
    %11 = vector.broadcast %10 : vector<1x128xf32> to vector<8x128xf32>
    %12 = arith.addf %9, %11 : vector<8x128xf32>
    %cst_11 = arith.constant 0.000000e+00 : f32
    %13 = vector.broadcast %cst_11 : f32 to vector<8x128xf32>
    %14 = arith.maximumf %12, %13 : vector<8x128xf32>
    %c0_12 = arith.constant 0 : index
    %c0_13 = arith.constant 0 : index
    %15 = vector.load %arg6[%c0_12, %c0_13] : memref<128x128xf32, #tpu.memory_space<vmem>>, vector<128x128xf32>
    %cst_14 = arith.constant dense<0.000000e+00> : vector<8x128xf32>
    %16 = tpu.matmul %14, %15, %cst_14 {dimension_numbers = #tpu.dot_dimension_numbers<[1], [0], [0], [1], [0, 0, 1, 1], [], []>} : vector<8x128xf32>, vector<128x128xf32>, vector<8x128xf32> -> vector<8x128xf32>
    %c0_15 = arith.constant 0 : index
    %c0_16 = arith.constant 0 : index
    %17 = vector.load %arg7[%c0_15, %c0_16] : memref<1x128xf32, #tpu.memory_space<vmem>>, vector<1x128xf32>
    %18 = vector.broadcast %17 : vector<1x128xf32> to vector<8x128xf32>
    %19 = arith.addf %16, %18 : vector<8x128xf32>
    %cst_17 = arith.constant 0.000000e+00 : f32
    %20 = vector.broadcast %cst_17 : f32 to vector<8x128xf32>
    %21 = arith.maximumf %19, %20 : vector<8x128xf32>
    %c0_18 = arith.constant 0 : index
    %c0_19 = arith.constant 0 : index
    %22 = vector.load %arg8[%c0_18, %c0_19] : memref<128x128xf32, #tpu.memory_space<vmem>>, vector<128x128xf32>
    %cst_20 = arith.constant dense<0.000000e+00> : vector<8x128xf32>
    %23 = tpu.matmul %21, %22, %cst_20 {dimension_numbers = #tpu.dot_dimension_numbers<[1], [0], [0], [1], [0, 0, 1, 1], [], []>} : vector<8x128xf32>, vector<128x128xf32>, vector<8x128xf32> -> vector<8x128xf32>
    %c0_21 = arith.constant 0 : index
    %c0_22 = arith.constant 0 : index
    %24 = vector.load %arg9[%c0_21, %c0_22] : memref<1x128xf32, #tpu.memory_space<vmem>>, vector<1x128xf32>
    %25 = vector.broadcast %24 : vector<1x128xf32> to vector<8x128xf32>
    %26 = arith.addf %23, %25 : vector<8x128xf32>
    %27 = tpu.iota {dimensions = array<i32: 1>} : vector<8x128xi32>
    %c8_i32 = arith.constant 8 : i32
    %28 = vector.broadcast %c8_i32 : i32 to vector<8x128xi32>
    %29 = arith.cmpi slt, %27, %28 : vector<8x128xi32>
    %cst_23 = arith.constant -1.000000e+30 : f32
    %30 = vector.broadcast %cst_23 : f32 to vector<8x128xf32>
    %31 = arith.select %29, %26, %30 : vector<8x128xi1>, vector<8x128xf32>
    %cst_24 = arith.constant dense<0xFF800000> : vector<8xf32>
    %32 = vector.multi_reduction <maximumf>, %31, %cst_24 [1] : vector<8x128xf32> to vector<8xf32>
    %33 = vector.shape_cast %32 : vector<8xf32> to vector<8x1xf32>
    %34 = vector.broadcast %33 : vector<8x1xf32> to vector<8x128xf32>
    %35 = arith.subf %31, %34 : vector<8x128xf32>
    %36 = math.exp %35 : vector<8x128xf32>
    %cst_25 = arith.constant dense<0.000000e+00> : vector<8xf32>
    %37 = vector.multi_reduction <add>, %36, %cst_25 [1] : vector<8x128xf32> to vector<8xf32>
    %38 = vector.shape_cast %37 : vector<8xf32> to vector<8x1xf32>
    %39 = tpu.reciprocal %38 : vector<8x1xf32> -> vector<8x1xf32>
    %40 = vector.broadcast %39 : vector<8x1xf32> to vector<8x128xf32>
    %41 = arith.mulf %36, %40 : vector<8x128xf32>
    %c8_i32_26 = arith.constant 8 : i32
    %42 = vector.broadcast %c8_i32_26 : i32 to vector<8x128xi32>
    %43 = arith.cmpi eq, %27, %42 : vector<8x128xi32>
    %cst_27 = arith.constant 0.000000e+00 : f32
    %44 = vector.broadcast %cst_27 : f32 to vector<8x128xf32>
    %45 = arith.select %43, %26, %44 : vector<8x128xi1>, vector<8x128xf32>
    %46 = arith.select %29, %41, %45 : vector<8x128xi1>, vector<8x128xf32>
    %c0_28 = arith.constant 0 : index
    %c0_29 = arith.constant 0 : index
    %47 = vector.load %arg10[%c0_28, %c0_29] : memref<8x128xf32, #tpu.memory_space<vmem>>, vector<8x128xf32>
    tpu.vector_store %arg10[%c0_28, %c0_29], %46 {strides = array<i32>} : memref<8x128xf32, #tpu.memory_space<vmem>>, vector<8x128xf32>,
    return
  }
  func.func @transform_0(%arg0: i32) -> (i32, i32) {
    %c0_i32 = arith.constant 0 : i32
    %c0_i32_0 = arith.constant 0 : i32
    return %arg0, %c0_i32 : i32, i32
  }
  func.func @transform_1(%arg0: i32) -> (i32, i32) {
    %c0_i32 = arith.constant 0 : i32
    %c0_i32_0 = arith.constant 0 : i32
    %c0_i32_1 = arith.constant 0 : i32
    return %c0_i32, %c0_i32_0 : i32, i32
  }
  func.func @transform_2(%arg0: i32) -> (i32, i32) {
    %c0_i32 = arith.constant 0 : i32
    %c0_i32_0 = arith.constant 0 : i32
    %c0_i32_1 = arith.constant 0 : i32
    return %c0_i32, %c0_i32_0 : i32, i32
  }
  func.func @transform_3(%arg0: i32) -> (i32, i32) {
    %c0_i32 = arith.constant 0 : i32
    %c0_i32_0 = arith.constant 0 : i32
    %c0_i32_1 = arith.constant 0 : i32
    return %c0_i32, %c0_i32_0 : i32, i32
  }
  func.func @transform_4(%arg0: i32) -> (i32, i32) {
    %c0_i32 = arith.constant 0 : i32
    %c0_i32_0 = arith.constant 0 : i32
    %c0_i32_1 = arith.constant 0 : i32
    return %c0_i32, %c0_i32_0 : i32, i32
  }
  func.func @transform_5(%arg0: i32) -> (i32, i32) {
    %c0_i32 = arith.constant 0 : i32
    %c0_i32_0 = arith.constant 0 : i32
    %c0_i32_1 = arith.constant 0 : i32
    return %c0_i32, %c0_i32_0 : i32, i32
  }
  func.func @transform_6(%arg0: i32) -> (i32, i32) {
    %c0_i32 = arith.constant 0 : i32
    %c0_i32_0 = arith.constant 0 : i32
    %c0_i32_1 = arith.constant 0 : i32
    return %c0_i32, %c0_i32_0 : i32, i32
  }
  func.func @transform_7(%arg0: i32) -> (i32, i32) {
    %c0_i32 = arith.constant 0 : i32
    %c0_i32_0 = arith.constant 0 : i32
    %c0_i32_1 = arith.constant 0 : i32
    return %c0_i32, %c0_i32_0 : i32, i32
  }
  func.func @transform_8(%arg0: i32) -> (i32, i32) {
    %c0_i32 = arith.constant 0 : i32
    %c0_i32_0 = arith.constant 0 : i32
    %c0_i32_1 = arith.constant 0 : i32
    return %c0_i32, %c0_i32_0 : i32, i32
  }
  func.func @transform_9(%arg0: i32) -> (i32, i32) {
    %c0_i32 = arith.constant 0 : i32
    %c0_i32_0 = arith.constant 0 : i32
    return %arg0, %c0_i32 : i32, i32
  }
}

</mosaic_0001>

<bundles_post_ra>
// kernel: tpu_custom_call.1
= control target key start
LH: loop header
LB: loop body
LE: loop exit
PB: predicated region body
PF: predicated region fallthrough
CT: control target
= control target key end

     0   :  { %14 = vsyncpa [#allocation3], 0  ;;  %s974_s0 = inlined_call_operand.hbm [shape: f32[8,16], index: 0, kind: input, shape index: {}]   ;;  %s975_s1 = inlined_call_operand.hbm [shape: f32[16,128], index: 1, kind: input, shape index: {}]   ;;  %s976_s2 = inlined_call_operand.vmem [shape: f32[1,128], index: 2, kind: input, shape index: {}]   ;;  %s977_s3 = inlined_call_operand.hbm [shape: f32[128,128], index: 3, kind: input, shape index: {}]   ;;  %s978_s4 = inlined_call_operand.vmem [shape: f32[1,128], index: 4, kind: input, shape index: {}]   ;;  %s979_s5 = inlined_call_operand.hbm [shape: f32[128,128], index: 5, kind: input, shape index: {}]   ;;  %s980_s6 = inlined_call_operand.vmem [shape: f32[1,128], index: 6, kind: input, shape index: {}]   ;;  %s981_s7 = inlined_call_operand.hbm [shape: f32[128,128], index: 7, kind: input, shape index: {}]   ;;  %s982_s8 = inlined_call_operand.vmem [shape: f32[1,128], index: 8, kind: input, shape index: {}]   ;;  %s983_s9 = inlined_call_operand.hbm [shape: f32[8,128], index: 9, kind: output, shape index: {}]  }
   0x1   :  { %15 = vsyncpa [#allocation6], 0 }
   0x2   :  { %16 = vsyncpa [#allocation9], 0 }
   0x3   :  { %17 = vsyncpa [#allocation4], 0  ;;  %s812_s30 = smov [#allocation5]  }
   0x4   :  { %s33_s10 = sshll.u32 %s812_s30, 4  ;;  %s34_s10 = int_to_ptr.vmem [resolvable:$true] %s33_s10 }
   0x5   :  { %s692_s11 = scalar_lea.vmem %s34_s10, 256  ;;  %p697_p1 = scmp.lt.s32.totalorder %s34_s10, %s34_s10 }
   0x6   :  { %p693_p0 = scmp.ne.s32.totalorder %s34_s10, %s692_s11  ;;  %p698_p2 = scmp.lt.s32.totalorder %s692_s11, %s692_s11 }
   0x8   :  { %p699_p3 = por %p698_p2, %p697_p1 }
   0xa   :  { %p700_p4 = pnand %p699_p3, %p693_p0 }
   0xc   :  { %703 = shalt.err (!%p700_p4)
}
   0xd   :  { %s813_s12 = smov 128   ;;  %s814_s13 = smov 8  }
   0xe   :  { %39 = dma.hbm_to_vmem [thread:$0]  %s975_s1, 256, %s34_s10, [#allocation6], %s813_s12, %s813_s12, %s814_s13  }
   0xf   :  { %s815_s16 = smov [#allocation8]   ;;  %s816_s18 = smov [#allocation2]  }
  0x10   :  { %s61_s17 = sshll.u32 %s815_s16, 4  ;;  %s24_s19 = sshll.u32 %s816_s18, 4  ;;  %s62_s17 = int_to_ptr.vmem [resolvable:$true] %s61_s17  ;;  %s25_s19 = int_to_ptr.vmem [resolvable:$true] %s24_s19 }
  0x11   :  { %s712_s20 = scalar_lea.vmem %s62_s17, 2048  ;;  %p717_p6 = scmp.lt.s32.totalorder %s62_s17, %s62_s17 }
  0x12   :  { %p713_p5 = scmp.ne.s32.totalorder %s62_s17, %s712_s20  ;;  %p718_p7 = scmp.lt.s32.totalorder %s712_s20, %s712_s20 }
  0x14   :  { %p719_p8 = por %p718_p7, %p717_p6 }
  0x16   :  { %p720_p9 = pnand %p719_p8, %p713_p5 }
  0x18   :  { %723 = shalt.err (!%p720_p9)
}
  0x19   :  { %67 = dma.hbm_to_vmem [thread:$0]  %s979_s5, 2048, %s62_s17, [#allocation9], %s813_s12, %s813_s12, %s814_s13  }
  0x1a   :  { %s732_s1 = scalar_lea.vmem %s25_s19, 128  ;;  %p737_p11 = scmp.lt.s32.totalorder %s25_s19, %s25_s19 }
  0x1b   :  { %p733_p10 = scmp.ne.s32.totalorder %s25_s19, %s732_s1  ;;  %p738_p12 = scmp.lt.s32.totalorder %s732_s1, %s732_s1 }
  0x1d   :  { %p739_p13 = por %p738_p12, %p737_p11 }
  0x1f   :  { %p740_p0 = pnand %p739_p13, %p733_p10 }
  0x21   :  { %743 = shalt.err (!%p740_p0)
}
  0x22   :  { %27 = dma.hbm_to_vmem [thread:$0]  %s974_s0, 128, %s25_s19, [#allocation3]  }
  0x23   :  { %s817_s25 = smov [#allocation7]   ;;  %s818_s27 = smov [#allocation10]  }
  0x24   :  { %s47_s26 = sshll.u32 %s817_s25, 4  ;;  %s75_s28 = sshll.u32 %s818_s27, 4  ;;  %s48_s26 = int_to_ptr.vmem [resolvable:$true] %s47_s26  ;;  %s76_s28 = int_to_ptr.vmem [resolvable:$true] %s75_s28 }
  0x25   :  { %s752_s29 = scalar_lea.vmem %s48_s26, 2048  ;;  %p757_p2 = scmp.lt.s32.totalorder %s48_s26, %s48_s26 }
  0x26   :  { %p753_p1 = scmp.ne.s32.totalorder %s48_s26, %s752_s29  ;;  %p758_p3 = scmp.lt.s32.totalorder %s752_s29, %s752_s29 }
  0x28   :  { %p759_p4 = por %p758_p3, %p757_p2 }
  0x2a   :  { %p760_p5 = pnand %p759_p4, %p753_p1 }
  0x2c   :  { %763 = shalt.err (!%p760_p5)
}
  0x2d   :  { %53 = dma.hbm_to_vmem [thread:$0]  %s977_s3, 2048, %s48_s26, [#allocation6], %s813_s12, %s813_s12, %s814_s13  }
  0x2e   :  { %s772_s0 = scalar_lea.vmem %s76_s28, 2048  ;;  %p777_p7 = scmp.lt.s32.totalorder %s76_s28, %s76_s28 }
  0x2f   :  { %p773_p6 = scmp.ne.s32.totalorder %s76_s28, %s772_s0  ;;  %p778_p8 = scmp.lt.s32.totalorder %s772_s0, %s772_s0 }
  0x31   :  { %p779_p9 = por %p778_p8, %p777_p7 }
  0x33   :  { %p780_p10 = pnand %p779_p9, %p773_p6 }
  0x35   :  { %783 = shalt.err (!%p780_p10)
}
  0x36   :  { %81 = dma.hbm_to_vmem [thread:$0]  %s981_s7, 2048, %s76_s28, [#allocation9], %s813_s12, %s813_s12, %s814_s13  }
  0x37   :  { %804 = dma.done.wait [#allocation3], 128  }
  0x38   :  { %805 = vsyncadd [#allocation3], 4294967168 }
  0x39   :  { %806 = dma.done.wait [#allocation6], 2304  }
  0x3a   :  { %807 = vsyncadd [#allocation6], 4294964992 }
  0x3b   :  { %808 = dma.done.wait [#allocation9], 4096  }
  0x3c   :  { %809 = vsyncadd [#allocation9], 4294963200  ;;  %v819_v0 = vmov 0.0   ;;  %vm820_vm0 = vmmov 0   ;;  %v101_v1 = vld [vmem:[#allocation5 + $0x8] sm:$0xff]  ;;  %v100_v2 = vld [vmem:[#allocation5] sm:$0xff] }
  0x3d   :  { %558 = vmatprep.subr.mxu0 %v819_v0  ;;  %562 = vmatprep.mubr.msk.f32.mxu0 %vm820_vm0, %v819_v0  ;;  %v99_v3 = vld [vmem:[#allocation2] sm:$0xff]  ;;  %vm109_vm1 = vcmask 130048   ;;  %v199_v4 = vld [vmem:[#allocation7 + $0x78] sm:$0xff]  ;;  %v198_v5 = vld [vmem:[#allocation7 + $0x70] sm:$0xff] }
  0x3e   :  { %565 = vmatprep.subr.mxu1 %v819_v0  ;;  %597 = vmatprep.mubr.msk.f32.mxu1 %vm820_vm0, %v819_v0  ;;  %v197_v6 = vld [vmem:[#allocation7 + $0x68] sm:$0xff]  ;;  %v196_v7 = vld [vmem:[#allocation7 + $0x60] sm:$0xff]  ;;  %v195_v8 = vld [vmem:[#allocation7 + $0x58] sm:$0xff] }
  0x3f   :  { %559 = vmatpush3.msra.mxu0 %v101_v1  ;;  %566 = vmatpush3.msra.mxu1 %v199_v4  ;;  %v194_v9 = vld [vmem:[#allocation7 + $0x50] sm:$0xff]  ;;  %v193_v10 = vld [vmem:[#allocation7 + $0x48] sm:$0xff]  ;;  %v192_v11 = vld [vmem:[#allocation7 + $0x40] sm:$0xff]  ;;  %v465_v4 = vlaneseq }
  0x40   :  { %560 = vmatprep.subr.mxu0 %v819_v0  ;;  %567 = vmatprep.subr.mxu1 %v819_v0  ;;  %v191_v12 = vld [vmem:[#allocation7 + $0x38] sm:$0xff]  ;;  %v190_v13 = vld [vmem:[#allocation7 + $0x30] sm:$0xff]  ;;  %v189_v14 = vld [vmem:[#allocation7 + $0x28] sm:$0xff] }
  0x41   :  { %561 = vmatpush3.msra.mxu0 %v100_v2  ;;  %568 = vmatpush3.msra.mxu1 %v198_v5  ;;  %v188_v15 = vld [vmem:[#allocation7 + $0x20] sm:$0xff]  ;;  %v187_v16 = vld [vmem:[#allocation7 + $0x18] sm:$0xff]  ;;  %v186_v17 = vld [vmem:[#allocation7 + $0x10] sm:$0xff]  ;;  %v466_v5 = vand.u32 127, %v465_v4 }
  0x42   :  { %563 = vmatmul.mubr.msk.f32.vlgmr.msra.gmra.mxu0 %vm109_vm1, %v99_v3  ;;  %569 = vmatprep.subr.mxu1 %v819_v0  ;;  %v185_v18 = vld [vmem:[#allocation7 + $0x8] sm:$0xff]  ;;  %v184_v19 = vld [vmem:[#allocation7] sm:$0xff]  ;;  %v293_v20 = vld [vmem:[#allocation8 + $0x78] sm:$0xff] }
  0x43   :  { %600 = vmatprep.subr.mxu0 %v819_v0  ;;  %570 = vmatpush3.msra.mxu1 %v197_v6  ;;  %v292_v21 = vld [vmem:[#allocation8 + $0x70] sm:$0xff]  ;;  %v291_v22 = vld [vmem:[#allocation8 + $0x68] sm:$0xff]  ;;  %v290_v23 = vld [vmem:[#allocation8 + $0x60] sm:$0xff]  ;;  %vm478_vm2 = vcmp.eq.s32.totalorder %v466_v5, 8  ;;  %vm467_vm3 = vcmp.lt.s32.totalorder %v466_v5, 8 }
  0x44   :  { %632 = vmatprep.mubr.msk.f32.mxu0 %vm820_vm0, %v819_v0  ;;  %571 = vmatprep.subr.mxu1 %v819_v0  ;;  %v289_v24 = vld [vmem:[#allocation8 + $0x58] sm:$0xff]  ;;  %v288_v25 = vld [vmem:[#allocation8 + $0x50] sm:$0xff]  ;;  %v287_v26 = vld [vmem:[#allocation8 + $0x48] sm:$0xff] }
  0x45   :  { %572 = vmatpush3.msra.mxu1 %v196_v7  ;;  %601 = vmatpush3.msra.mxu0 %v293_v20  ;;  %v286_v27 = vld [vmem:[#allocation8 + $0x40] sm:$0xff]  ;;  %v285_v28 = vld [vmem:[#allocation8 + $0x38] sm:$0xff]  ;;  %v284_v29 = vld [vmem:[#allocation8 + $0x30] sm:$0xff] }
  0x46   :  { %573 = vmatprep.subr.mxu1 %v819_v0  ;;  %602 = vmatprep.subr.mxu0 %v819_v0  ;;  %v283_v30 = vld [vmem:[#allocation8 + $0x28] sm:$0xff]  ;;  %v282_v31 = vld [vmem:[#allocation8 + $0x20] sm:$0xff]  ;;  %v281_v32 = vld [vmem:[#allocation8 + $0x18] sm:$0xff] }
  0x47   :  { %574 = vmatpush3.msra.mxu1 %v195_v8  ;;  %603 = vmatpush3.msra.mxu0 %v292_v21  ;;  %v499_v33 = vld [vmem:[%s976_s2] ss:$0 sm:$0xff]  ;;  %v280_v38 = vld [vmem:[#allocation8 + $0x10] sm:$0xff]  ;;  %v278_v40 = vld [vmem:[#allocation8] sm:$0xff] }
  0x48   :  { %575 = vmatprep.subr.mxu1 %v819_v0  ;;  %604 = vmatprep.subr.mxu0 %v819_v0  ;;  %v279_v39 = vld [vmem:[#allocation8 + $0x8] sm:$0xff]  ;;  %v387_v41 = vld [vmem:[#allocation10 + $0x78] sm:$0xff]  ;;  %v386_v42 = vld [vmem:[#allocation10 + $0x70] sm:$0xff] }
  0x49   :  { %576 = vmatpush3.msra.mxu1 %v194_v9  ;;  %605 = vmatpush3.msra.mxu0 %v291_v22  ;;  %v385_v43 = vld [vmem:[#allocation10 + $0x68] sm:$0xff]  ;;  %v384_v44 = vld [vmem:[#allocation10 + $0x60] sm:$0xff]  ;;  %v383_v45 = vld [vmem:[#allocation10 + $0x58] sm:$0xff] }
  0x4a   :  { %577 = vmatprep.subr.mxu1 %v819_v0  ;;  %606 = vmatprep.subr.mxu0 %v819_v0  ;;  %v382_v46 = vld [vmem:[#allocation10 + $0x50] sm:$0xff]  ;;  %v381_v47 = vld [vmem:[#allocation10 + $0x48] sm:$0xff]  ;;  %v380_v48 = vld [vmem:[#allocation10 + $0x40] sm:$0xff] }
  0x4b   :  { %578 = vmatpush3.msra.mxu1 %v193_v10  ;;  %607 = vmatpush3.msra.mxu0 %v290_v23  ;;  %v379_v49 = vld [vmem:[#allocation10 + $0x38] sm:$0xff]  ;;  %v378_v50 = vld [vmem:[#allocation10 + $0x30] sm:$0xff]  ;;  %v377_v51 = vld [vmem:[#allocation10 + $0x28] sm:$0xff] }
  0x4c   :  { %579 = vmatprep.subr.mxu1 %v819_v0  ;;  %608 = vmatprep.subr.mxu0 %v819_v0  ;;  %v376_v52 = vld [vmem:[#allocation10 + $0x20] sm:$0xff]  ;;  %v375_v53 = vld [vmem:[#allocation10 + $0x18] sm:$0xff]  ;;  %v501_v54 = vld [vmem:[%s978_s4] ss:$0 sm:$0xff] }
  0x4d   :  { %580 = vmatpush3.msra.mxu1 %v192_v11  ;;  %609 = vmatpush3.msra.mxu0 %v289_v24  ;;  %v374_v59 = vld [vmem:[#allocation10 + $0x10] sm:$0xff]  ;;  %v373_v60 = vld [vmem:[#allocation10 + $0x8] sm:$0xff]  ;;  %v372_v61 = vld [vmem:[#allocation10] sm:$0xff] }
  0x4e   :  { %581 = vmatprep.subr.mxu1 %v819_v0  ;;  %610 = vmatprep.subr.mxu0 %v819_v0  ;;  %v502_v62 = vld [vmem:[%s980_s6] ss:$0 sm:$0xff]  ;;  %s821_s6 = smov [#allocation11]  }
  0x4f   :  { %582 = vmatpush3.msra.mxu1 %v191_v12  ;;  %611 = vmatpush3.msra.mxu0 %v288_v25  ;;  %v503_v6 = vld [vmem:[%s982_s8] ss:$0 sm:$0xff]  ;;  %s488_s16 = sshll.u32 %s821_s6, 4  ;;  %s489_s16 = int_to_ptr.vmem [resolvable:$true] %s488_s16 }
  0x50   :  { %583 = vmatprep.subr.mxu1 %v819_v0  ;;  %612 = vmatprep.subr.mxu0 %v819_v0  ;;  %s784_s8 = scalar_lea.vmem %s489_s16, 128  ;;  %p789_p12 = scmp.lt.s32.totalorder %s489_s16, %s489_s16 }
  0x51   :  { %584 = vmatpush3.msra.mxu1 %v190_v13  ;;  %613 = vmatpush3.msra.mxu0 %v287_v26  ;;  %p785_p11 = scmp.ne.s32.totalorder %s489_s16, %s784_s8  ;;  %p790_p13 = scmp.lt.s32.totalorder %s784_s8, %s784_s8 }
  0x52   :  { %585 = vmatprep.subr.mxu1 %v819_v0  ;;  %614 = vmatprep.subr.mxu0 %v819_v0 }
  0x53   :  { %586 = vmatpush3.msra.mxu1 %v189_v14  ;;  %615 = vmatpush3.msra.mxu0 %v286_v27  ;;  %p791_p0 = por %p790_p13, %p789_p12 }
  0x54   :  { %587 = vmatprep.subr.mxu1 %v819_v0  ;;  %616 = vmatprep.subr.mxu0 %v819_v0 }
  0x55   :  { %588 = vmatpush3.msra.mxu1 %v188_v15  ;;  %617 = vmatpush3.msra.mxu0 %v285_v28  ;;  %p792_p1 = pnand %p791_p0, %p785_p11 }
  0x56   :  { %589 = vmatprep.subr.mxu1 %v819_v0  ;;  %618 = vmatprep.subr.mxu0 %v819_v0 }
  0x57   :  { %590 = vmatpush3.msra.mxu1 %v187_v16  ;;  %619 = vmatpush3.msra.mxu0 %v284_v29 }
  0x58   :  { %591 = vmatprep.subr.mxu1 %v819_v0  ;;  %620 = vmatprep.subr.mxu0 %v819_v0 }
  0x59   :  { %592 = vmatpush3.msra.mxu1 %v186_v17  ;;  %621 = vmatpush3.msra.mxu0 %v283_v30 }
  0x5a   :  { %593 = vmatprep.subr.mxu1 %v819_v0  ;;  %622 = vmatprep.subr.mxu0 %v819_v0 }
  0x5b   :  { %594 = vmatpush3.msra.mxu1 %v185_v18  ;;  %623 = vmatpush3.msra.mxu0 %v282_v31 }
  0x5c   :  { %595 = vmatprep.subr.mxu1 %v819_v0  ;;  %624 = vmatprep.subr.mxu0 %v819_v0 }
  0x5d   :  { %596 = vmatpush3.msra.mxu1 %v184_v19  ;;  %625 = vmatpush3.msra.mxu0 %v281_v32 }
  0x5e   :  { %635 = vmatprep.subr.mxu1 %v819_v0  ;;  %626 = vmatprep.subr.mxu0 %v819_v0 }
  0x5f   :  { %627 = vmatpush3.msra.mxu0 %v280_v38 }
  0x60   :  { %628 = vmatprep.subr.mxu0 %v819_v0 }
  0x61   :  { %629 = vmatpush3.msra.mxu0 %v279_v39 }
  0x62   :  { %630 = vmatprep.subr.mxu0 %v819_v0 }
  0x63   :  { %631 = vmatpush3.msra.mxu0 %v278_v40 }
 0x102   :  { %v179_v34 = vpop.f32.mrf.mxu0 }
 0x103   :  { %v180_v35 = vadd.f32 %v499_v33, %v179_v34 }
 0x104   :  { %v564_v36 = vpop.f32.mrf.mxu0 }
 0x105   :  { %v183_v37 = vmax.f32 %v180_v35, 0.0 }
 0x107   :  { %598 = vmatmul.mubr.f32.vlgmr.msra.gmra.mxu1 %v183_v37 }
 0x108   :  { %667 = vmatprep.mubr.msk.f32.mxu1 %vm820_vm0, %v819_v0  ;;  %636 = vmatpush3.msra.mxu1 %v387_v41 }
 0x109   :  { %637 = vmatprep.subr.mxu1 %v819_v0 }
 0x10a   :  { %638 = vmatpush3.msra.mxu1 %v386_v42 }
 0x10b   :  { %639 = vmatprep.subr.mxu1 %v819_v0 }
 0x10c   :  { %640 = vmatpush3.msra.mxu1 %v385_v43 }
 0x10d   :  { %641 = vmatprep.subr.mxu1 %v819_v0 }
 0x10e   :  { %642 = vmatpush3.msra.mxu1 %v384_v44 }
 0x10f   :  { %643 = vmatprep.subr.mxu1 %v819_v0 }
 0x110   :  { %644 = vmatpush3.msra.mxu1 %v383_v45 }
 0x111   :  { %645 = vmatprep.subr.mxu1 %v819_v0 }
 0x112   :  { %646 = vmatpush3.msra.mxu1 %v382_v46 }
 0x113   :  { %647 = vmatprep.subr.mxu1 %v819_v0 }
 0x114   :  { %648 = vmatpush3.msra.mxu1 %v381_v47 }
 0x115   :  { %649 = vmatprep.subr.mxu1 %v819_v0 }
 0x116   :  { %650 = vmatpush3.msra.mxu1 %v380_v48 }
 0x117   :  { %651 = vmatprep.subr.mxu1 %v819_v0 }
 0x118   :  { %652 = vmatpush3.msra.mxu1 %v379_v49 }
 0x119   :  { %653 = vmatprep.subr.mxu1 %v819_v0 }
 0x11a   :  { %654 = vmatpush3.msra.mxu1 %v378_v50 }
 0x11b   :  { %655 = vmatprep.subr.mxu1 %v819_v0 }
 0x11c   :  { %656 = vmatpush3.msra.mxu1 %v377_v51 }
 0x11d   :  { %657 = vmatprep.subr.mxu1 %v819_v0 }
 0x11e   :  { %658 = vmatpush3.msra.mxu1 %v376_v52 }
 0x11f   :  { %659 = vmatprep.subr.mxu1 %v819_v0 }
 0x120   :  { %660 = vmatpush3.msra.mxu1 %v375_v53 }
 0x121   :  { %661 = vmatprep.subr.mxu1 %v819_v0 }
 0x122   :  { %662 = vmatpush3.msra.mxu1 %v374_v59 }
 0x123   :  { %663 = vmatprep.subr.mxu1 %v819_v0 }
 0x124   :  { %664 = vmatpush3.msra.mxu1 %v373_v60 }
 0x125   :  { %665 = vmatprep.subr.mxu1 %v819_v0 }
 0x126   :  { %666 = vmatpush3.msra.mxu1 %v372_v61 }
 0x1c7   :  { %v273_v55 = vpop.f32.mrf.mxu1 }
 0x1c8   :  { %v274_v56 = vadd.f32 %v501_v54, %v273_v55 }
 0x1c9   :  { %v599_v57 = vpop.f32.mrf.mxu1 }
 0x1ca   :  { %v277_v58 = vmax.f32 %v274_v56, 0.0 }
 0x1cc   :  { %633 = vmatmul.mubr.f32.vlgmr.msra.gmra.mxu0 %v277_v58 }
 0x28c   :  { %v367_v63 = vpop.f32.mrf.mxu0 }
 0x28d   :  { %v368_v1 = vadd.f32 %v502_v62, %v367_v63 }
 0x28e   :  { %v634_v2 = vpop.f32.mrf.mxu0 }
 0x28f   :  { %v371_v3 = vmax.f32 %v368_v1, 0.0 }
 0x291   :  { %668 = vmatmul.mubr.f32.vlgmr.msra.gmra.mxu1 %v371_v3 }
 0x351   :  { %v461_v7 = vpop.f32.mrf.mxu1 }
 0x352   :  { %v462_v0 = vadd.f32 %v503_v6, %v461_v7 }
 0x353   :  { %v669_v8 = vpop.f32.mrf.mxu1 }
 0x354   :  { %v479_v9 = vsel %vm478_vm2, %v462_v0, 0.0  ;;  %v468_v10 = vsel %vm467_vm3, %v462_v0, -1e+30 }
 0x355   :  { %469 = vmax.xlane.f32.xlu0 %v468_v10 }
 0x3de   :  { %v470_v11 = vpop.xlane.xlu0 %469 }
 0x3df   :  { %v471_v12 = vsub.f32 %v468_v10, %v470_v11 }
 0x3e1   :  { %v472_v13 = vmul.f32 1.442695, %v471_v12 }
 0x3e3   :  { %680 = vpow2.f32 %v472_v13 }
 0x3f0   :  { %v681_v14 = vpop.eup %680 }
 0x3f1   :  { %474 = vadd.xlane.f32.xlu0 %v681_v14 }
 0x47a   :  { %v475_v15 = vpop.xlane.xlu0 %474 }
 0x47b   :  { %682 = vrcp.f32 %v475_v15 }
 0x488   :  { %v683_v16 = vpop.eup %682 }
 0x489   :  { %v477_v17 = vmul.f32 %v683_v16, %v681_v14 }
 0x48b   :  { %v480_v18 = vsel %vm467_vm3, %v477_v17, %v479_v9 }
 0x48c   :  { %481 = vst [vmem:[#allocation11] sm:$0xff] %v480_v18 }
 0x48d   :  { %795 = shalt.err (!%p792_p1)
}
 0x48e   :  { %491 = dma.vmem_to_hbm [thread:$0]  %s489_s16, 128, %s983_s9, [#allocation4]  }
 0x48f   :  { %810 = dma.done.wait [#allocation4], 128  }
 0x490   :  { %811 = vsyncadd [#allocation4], 4294967168 }
 0x491   :  { %495 = vsyncpa [#allocation3], 1 }
 0x492   :  { %496 = vsyncpa [#allocation6], 1 }
 0x493   :  { %497 = vsyncpa [#allocation9], 1 }
 0x494   :  { %498 = vsyncpa [#allocation4], 1 }

</bundles_post_ra>
